<compile_context>
chip_gen: v6e
topology: v6e:2x2x1
jax: 0.10.0
libtpu: 0.0.40
codegen_flags: <defaults>
</compile_context>

<pallas_src>
import math

import jax
import jax.numpy as jnp
from jax import lax
from jax.experimental import pallas as pl
from jax.experimental.pallas import tpu as pltpu


def _make_attention_kernel(bb, mxu_dtype):
    """Kernel for a (bb batches, tq query rows) block against the full K/V."""

    def kernel(q_ref, k_ref, v_ref, wq_ref, wk_ref, wv_ref,
               out_ref, score_ref, kp_ref, vp_ref):
        # Blocks: q_ref (bb, tq, H); k_ref/v_ref (bb, S, H); weights (H, A).
        # kp_ref/vp_ref: (bb, S, A) VMEM scratch holding projected K/V.
        # Inputs & weights arrive in bf16; wq is already scaled by 1/sqrt(A).

        # Project K/V only on the first query tile of each batch block; the
        # scratch persists across the (sequential, "arbitrary") q-tile axis.
        @pl.when(pl.program_id(1) == 0)
        def _():
            wk = wk_ref[...]
            wv = wv_ref[...]
            for b in range(bb):
                kp_ref[b] = jnp.dot(
                    k_ref[b], wk, preferred_element_type=jnp.float32
                ).astype(mxu_dtype)
                vp_ref[b] = jnp.dot(
                    v_ref[b], wv, preferred_element_type=jnp.float32
                ).astype(mxu_dtype)

        wq = wq_ref[...]
        # Small static unroll over the batch slice (bb == 1 for large problems).
        for b in range(bb):
            # Q projection on the MXU with f32 accumulation (scale folded in).
            q = jnp.dot(q_ref[b], wq,
                        preferred_element_type=jnp.float32).astype(mxu_dtype)
            k = kp_ref[b]  # (S, A) bf16, cached
            v = vp_ref[b]  # (S, A) bf16, cached

            # Scores: contract over the attention dim -- no explicit transpose.
            s = lax.dot_general(q, k, (((1,), (1,)), ((), ())),
                                preferred_element_type=jnp.float32)  # (tq, S)

            # Numerically stable softmax in f32.
            m = jnp.max(s, axis=-1, keepdims=True)
            e = jnp.exp(s - m)
            denom = jnp.sum(e, axis=-1, keepdims=True)
            p = e * pl.reciprocal(denom, approx=True)

            score_ref[b] = p.astype(score_ref.dtype)

            # Weighted values (dropout == identity in eval mode).
            o = jnp.dot(p.astype(mxu_dtype), v, preferred_element_type=jnp.float32)
            out_ref[b] = o.astype(out_ref.dtype)

    return kernel


def self_attention(query, key, value, wq, wk, wv, *, q_tile=None,
                   batch_tile=None, mxu_dtype=jnp.bfloat16,
                   vmem_limit_bytes=48 * 1024 * 1024):
    """query/key/value: (B, S, H) f32; wq/wk/wv: (A, H) nn.Linear weights.

    Returns (weighted_v (B, S, A) f32, attention_score (B, S, S) f32).
    """
    B, S, H = query.shape
    A = wq.shape[0]
    inv_scale = 1.0 / math.sqrt(float(A))

    # Host-side prep (free): transpose nn.Linear weights to (H, A), fold the
    # 1/sqrt(A) score scale into wq, cast all MXU inputs to bf16.
    wq_t = (jnp.asarray(wq).T * inv_scale).astype(mxu_dtype)
    wk_t = jnp.asarray(wk).T.astype(mxu_dtype)
    wv_t = jnp.asarray(wv).T.astype(mxu_dtype)
    q_in = query.astype(mxu_dtype)
    k_in = key.astype(mxu_dtype)
    v_in = value.astype(mxu_dtype)

    # Tile selection: fold the whole batch into one grid step when the working
    # set is tiny (toy sizes); otherwise one batch element per step with a
    # tiled query axis so the f32 (tq, S) score block stays in VMEM on v7x.
    if batch_tile is None:
        batch_tile = B if (B <= 8 and B * S * max(S, H) * 4 <= (2 << 20)) else 1
    if batch_tile < 1 or B % batch_tile != 0:
        batch_tile = 1
    if q_tile is None:
        q_tile = S if (S <= 512 or S % 512 != 0) else 512
    if S % q_tile != 0:
        q_tile = S
    bb, tq = batch_tile, q_tile

    kernel = _make_attention_kernel(bb, mxu_dtype)

    grid = (B // bb, S // tq)
    q_spec = pl.BlockSpec((bb, tq, H), lambda bi, qi: (bi, qi, 0))
    kv_spec = pl.BlockSpec((bb, S, H), lambda bi, qi: (bi, 0, 0))
    w_spec = pl.BlockSpec((H, A), lambda bi, qi: (0, 0))

    out_shapes = (
        jax.ShapeDtypeStruct((B, S, A), jnp.float32),
        jax.ShapeDtypeStruct((B, S, S), jnp.float32),
    )
    out_specs = (
        pl.BlockSpec((bb, tq, A), lambda bi, qi: (bi, qi, 0)),
        pl.BlockSpec((bb, tq, S), lambda bi, qi: (bi, qi, 0)),
    )

    return pl.pallas_call(
        kernel,
        out_shape=out_shapes,
        grid_spec=pltpu.PrefetchScalarGridSpec(
            num_scalar_prefetch=0,
            grid=grid,
            in_specs=[q_spec, kv_spec, kv_spec, w_spec, w_spec, w_spec],
            out_specs=out_specs,
            scratch_shapes=[
                pltpu.VMEM((bb, S, A), mxu_dtype),  # projected K cache
                pltpu.VMEM((bb, S, A), mxu_dtype),  # projected V cache
            ],
        ),
        compiler_params=pltpu.CompilerParams(
            # Query-tile axis must be sequential so the K/V projection cache
            # (computed at qi == 0) is valid for all subsequent q tiles.
            dimension_semantics=("parallel", "arbitrary"),
            vmem_limit_bytes=vmem_limit_bytes,
        ),
    )(q_in, k_in, v_in, wq_t, wk_t, wv_t)


def _reference(query, key, value, wq, wk, wv):
    A = wq.shape[0]
    q = jnp.einsum("bsh,ah->bsa", query, wq)
    k = jnp.einsum("bsh,ah->bsa", key, wk)
    v = jnp.einsum("bsh,ah->bsa", value, wv)
    s = jnp.einsum("bqa,bka->bqk", q, k) / jnp.sqrt(jnp.float32(A))
    p = jax.nn.softmax(s, axis=-1)
    o = jnp.einsum("bqk,bka->bqa", p, v)
    return o, p


def _run_case(B, S, H, n_head, seed, atol, rtol):
    A = H // n_head
    key0 = jax.random.PRNGKey(seed)
    kq, kk, kv, kwq, kwk, kwv = jax.random.split(key0, 6)

    query = jax.random.normal(kq, (B, S, H), dtype=jnp.float32)
    key_in = jax.random.normal(kk, (B, S, H), dtype=jnp.float32)
    value = jax.random.normal(kv, (B, S, H), dtype=jnp.float32)

    w_scale = 1.0 / math.sqrt(H)
    wq = jax.random.normal(kwq, (A, H), dtype=jnp.float32) * w_scale
    wk = jax.random.normal(kwk, (A, H), dtype=jnp.float32) * w_scale
    wv = jax.random.normal(kwv, (A, H), dtype=jnp.float32) * w_scale

    out, score = self_attention(query, key_in, value, wq, wk, wv)
    jax.block_until_ready((out, score))

    ref_out, ref_score = _reference(query, key_in, value, wq, wk, wv)
    assert jnp.allclose(out, ref_out, atol=atol, rtol=rtol), \
        f"output mismatch (B={B}, S={S})"
    assert jnp.allclose(score, ref_score, atol=atol, rtol=rtol), \
        f"score mismatch (B={B}, S={S})"


if __name__ == "__main__":
    # params: hidden_dim=32, n_head=4 -> attention_dim=8; batch=2, seq=8.
    # bf16 MXU inputs + approx reciprocal loosen the tolerance to ~5e-2.
    _run_case(B=2, S=8, H=32, n_head=4, seed=0, atol=5e-2, rtol=5e-2)

    # Larger sequence exercises the tiled-query path (grid q axis of size 2)
    # and the cached K/V projection (pl.when(qi == 0) + VMEM scratch reuse).
    _run_case(B=2, S=1024, H=32, n_head=4, seed=0, atol=1e-1, rtol=1e-1)

    print("KERNEL_OK")
</pallas_src>

<mosaic_0001>
module attributes {stable_mosaic.version = 11 : i64} {
  func.func @kernel(%arg0: i32, %arg1: i32, %arg2: memref<2x8x32xbf16, #tpu.memory_space<vmem>>, %arg3: memref<2x8x32xbf16, #tpu.memory_space<vmem>>, %arg4: memref<2x8x32xbf16, #tpu.memory_space<vmem>>, %arg5: memref<32x8xbf16, #tpu.memory_space<vmem>>, %arg6: memref<32x8xbf16, #tpu.memory_space<vmem>>, %arg7: memref<32x8xbf16, #tpu.memory_space<vmem>>, %arg8: memref<2x8x8xf32, #tpu.memory_space<vmem>>, %arg9: memref<2x8x8xf32, #tpu.memory_space<vmem>>, %arg10: memref<2x8x8xbf16, #tpu.memory_space<vmem>>, %arg11: memref<2x8x8xbf16, #tpu.memory_space<vmem>>) attributes {dimension_semantics = [#tpu.dimension_semantics<parallel>, #tpu.dimension_semantics<arbitrary>], iteration_bounds = array<i64: 1, 1>, scalar_prefetch = 0 : i64, scratch_operands = 2 : i64, tpu.core_type = #tpu.core_type<tc>, window_params = [{transform_indices = @transform_0, window_bounds = array<i64: 2, 8, 32>}, {transform_indices = @transform_1, window_bounds = array<i64: 2, 8, 32>}, {transform_indices = @transform_2, window_bounds = array<i64: 2, 8, 32>}, {pipeline_mode = #tpu.pipeline_mode<synchronous>, transform_indices = @transform_3, window_bounds = array<i64: 32, 8>}, {pipeline_mode = #tpu.pipeline_mode<synchronous>, transform_indices = @transform_4, window_bounds = array<i64: 32, 8>}, {pipeline_mode = #tpu.pipeline_mode<synchronous>, transform_indices = @transform_5, window_bounds = array<i64: 32, 8>}, {transform_indices = @transform_6, window_bounds = array<i64: 2, 8, 8>}, {transform_indices = @transform_7, window_bounds = array<i64: 2, 8, 8>}]} {
    %c0_i32 = arith.constant 0 : i32
    %0 = arith.cmpi eq, %arg1, %c0_i32 : i32
    %1 = arith.extui %0 : i1 to i32
    %c0_i32_0 = arith.constant 0 : i32
    %2 = arith.cmpi ne, %1, %c0_i32_0 : i32
    scf.if %2 {
      %c0_40 = arith.constant 0 : index
      %c0_41 = arith.constant 0 : index
      %58 = vector.load %arg6[%c0_40, %c0_41] : memref<32x8xbf16, #tpu.memory_space<vmem>>, vector<32x8xbf16>
      %c0_42 = arith.constant 0 : index
      %c0_43 = arith.constant 0 : index
      %59 = vector.load %arg7[%c0_42, %c0_43] : memref<32x8xbf16, #tpu.memory_space<vmem>>, vector<32x8xbf16>
      %c0_44 = arith.constant 0 : index
      %c0_45 = arith.constant 0 : index
      %c0_46 = arith.constant 0 : index
      %60 = vector.load %arg3[%c0_44, %c0_45, %c0_46] : memref<2x8x32xbf16, #tpu.memory_space<vmem>>, vector<1x8x32xbf16>
      %61 = vector.shape_cast %60 : vector<1x8x32xbf16> to vector<8x32xbf16>
      %cst_47 = arith.constant dense<0.000000e+00> : vector<8x8xf32>
      %62 = tpu.matmul %61, %58, %cst_47 {dimension_numbers = #tpu.dot_dimension_numbers<[1], [0], [0], [1], [0, 0, 1, 1], [], []>} : vector<8x32xbf16>, vector<32x8xbf16>, vector<8x8xf32> -> vector<8x8xf32>
      %63 = arith.truncf %62 : vector<8x8xf32> to vector<8x8xbf16>
      %c0_48 = arith.constant 0 : index
      %c0_49 = arith.constant 0 : index
      %c0_50 = arith.constant 0 : index
      %64 = vector.load %arg10[%c0_48, %c0_49, %c0_50] : memref<2x8x8xbf16, #tpu.memory_space<vmem>>, vector<1x8x8xbf16>
      %65 = vector.shape_cast %64 : vector<1x8x8xbf16> to vector<8x8xbf16>
      %66 = vector.shape_cast %63 : vector<8x8xbf16> to vector<1x8x8xbf16>
      tpu.vector_store %arg10[%c0_48, %c0_49, %c0_50], %66 {strides = array<i32>} : memref<2x8x8xbf16, #tpu.memory_space<vmem>>, vector<1x8x8xbf16>,
      %c0_51 = arith.constant 0 : index
      %c0_52 = arith.constant 0 : index
      %c0_53 = arith.constant 0 : index
      %67 = vector.load %arg4[%c0_51, %c0_52, %c0_53] : memref<2x8x32xbf16, #tpu.memory_space<vmem>>, vector<1x8x32xbf16>
      %68 = vector.shape_cast %67 : vector<1x8x32xbf16> to vector<8x32xbf16>
      %cst_54 = arith.constant dense<0.000000e+00> : vector<8x8xf32>
      %69 = tpu.matmul %68, %59, %cst_54 {dimension_numbers = #tpu.dot_dimension_numbers<[1], [0], [0], [1], [0, 0, 1, 1], [], []>} : vector<8x32xbf16>, vector<32x8xbf16>, vector<8x8xf32> -> vector<8x8xf32>
      %70 = arith.truncf %69 : vector<8x8xf32> to vector<8x8xbf16>
      %c0_55 = arith.constant 0 : index
      %c0_56 = arith.constant 0 : index
      %c0_57 = arith.constant 0 : index
      %71 = vector.load %arg11[%c0_55, %c0_56, %c0_57] : memref<2x8x8xbf16, #tpu.memory_space<vmem>>, vector<1x8x8xbf16>
      %72 = vector.shape_cast %71 : vector<1x8x8xbf16> to vector<8x8xbf16>
      %73 = vector.shape_cast %70 : vector<8x8xbf16> to vector<1x8x8xbf16>
      tpu.vector_store %arg11[%c0_55, %c0_56, %c0_57], %73 {strides = array<i32>} : memref<2x8x8xbf16, #tpu.memory_space<vmem>>, vector<1x8x8xbf16>,
      %c1_58 = arith.constant 1 : index
      %c0_59 = arith.constant 0 : index
      %c0_60 = arith.constant 0 : index
      %74 = vector.load %arg3[%c1_58, %c0_59, %c0_60] : memref<2x8x32xbf16, #tpu.memory_space<vmem>>, vector<1x8x32xbf16>
      %75 = vector.shape_cast %74 : vector<1x8x32xbf16> to vector<8x32xbf16>
      %cst_61 = arith.constant dense<0.000000e+00> : vector<8x8xf32>
      %76 = tpu.matmul %75, %58, %cst_61 {dimension_numbers = #tpu.dot_dimension_numbers<[1], [0], [0], [1], [0, 0, 1, 1], [], []>} : vector<8x32xbf16>, vector<32x8xbf16>, vector<8x8xf32> -> vector<8x8xf32>
      %77 = arith.truncf %76 : vector<8x8xf32> to vector<8x8xbf16>
      %c1_62 = arith.constant 1 : index
      %c0_63 = arith.constant 0 : index
      %c0_64 = arith.constant 0 : index
      %78 = vector.load %arg10[%c1_62, %c0_63, %c0_64] : memref<2x8x8xbf16, #tpu.memory_space<vmem>>, vector<1x8x8xbf16>
      %79 = vector.shape_cast %78 : vector<1x8x8xbf16> to vector<8x8xbf16>
      %80 = vector.shape_cast %77 : vector<8x8xbf16> to vector<1x8x8xbf16>
      tpu.vector_store %arg10[%c1_62, %c0_63, %c0_64], %80 {strides = array<i32>} : memref<2x8x8xbf16, #tpu.memory_space<vmem>>, vector<1x8x8xbf16>,
      %c1_65 = arith.constant 1 : index
      %c0_66 = arith.constant 0 : index
      %c0_67 = arith.constant 0 : index
      %81 = vector.load %arg4[%c1_65, %c0_66, %c0_67] : memref<2x8x32xbf16, #tpu.memory_space<vmem>>, vector<1x8x32xbf16>
      %82 = vector.shape_cast %81 : vector<1x8x32xbf16> to vector<8x32xbf16>
      %cst_68 = arith.constant dense<0.000000e+00> : vector<8x8xf32>
      %83 = tpu.matmul %82, %59, %cst_68 {dimension_numbers = #tpu.dot_dimension_numbers<[1], [0], [0], [1], [0, 0, 1, 1], [], []>} : vector<8x32xbf16>, vector<32x8xbf16>, vector<8x8xf32> -> vector<8x8xf32>
      %84 = arith.truncf %83 : vector<8x8xf32> to vector<8x8xbf16>
      %c1_69 = arith.constant 1 : index
      %c0_70 = arith.constant 0 : index
      %c0_71 = arith.constant 0 : index
      %85 = vector.load %arg11[%c1_69, %c0_70, %c0_71] : memref<2x8x8xbf16, #tpu.memory_space<vmem>>, vector<1x8x8xbf16>
      %86 = vector.shape_cast %85 : vector<1x8x8xbf16> to vector<8x8xbf16>
      %87 = vector.shape_cast %84 : vector<8x8xbf16> to vector<1x8x8xbf16>
      tpu.vector_store %arg11[%c1_69, %c0_70, %c0_71], %87 {strides = array<i32>} : memref<2x8x8xbf16, #tpu.memory_space<vmem>>, vector<1x8x8xbf16>,
    } else {
    }
    %c0 = arith.constant 0 : index
    %c0_1 = arith.constant 0 : index
    %3 = vector.load %arg5[%c0, %c0_1] : memref<32x8xbf16, #tpu.memory_space<vmem>>, vector<32x8xbf16>
    %c0_2 = arith.constant 0 : index
    %c0_3 = arith.constant 0 : index
    %c0_4 = arith.constant 0 : index
    %4 = vector.load %arg2[%c0_2, %c0_3, %c0_4] : memref<2x8x32xbf16, #tpu.memory_space<vmem>>, vector<1x8x32xbf16>
    %5 = vector.shape_cast %4 : vector<1x8x32xbf16> to vector<8x32xbf16>
    %cst = arith.constant dense<0.000000e+00> : vector<8x8xf32>
    %6 = tpu.matmul %5, %3, %cst {dimension_numbers = #tpu.dot_dimension_numbers<[1], [0], [0], [1], [0, 0, 1, 1], [], []>} : vector<8x32xbf16>, vector<32x8xbf16>, vector<8x8xf32> -> vector<8x8xf32>
    %7 = arith.truncf %6 : vector<8x8xf32> to vector<8x8xbf16>
    %c0_5 = arith.constant 0 : index
    %c0_6 = arith.constant 0 : index
    %c0_7 = arith.constant 0 : index
    %8 = vector.load %arg10[%c0_5, %c0_6, %c0_7] : memref<2x8x8xbf16, #tpu.memory_space<vmem>>, vector<1x8x8xbf16>
    %9 = vector.shape_cast %8 : vector<1x8x8xbf16> to vector<8x8xbf16>
    %c0_8 = arith.constant 0 : index
    %c0_9 = arith.constant 0 : index
    %c0_10 = arith.constant 0 : index
    %10 = vector.load %arg11[%c0_8, %c0_9, %c0_10] : memref<2x8x8xbf16, #tpu.memory_space<vmem>>, vector<1x8x8xbf16>
    %11 = vector.shape_cast %10 : vector<1x8x8xbf16> to vector<8x8xbf16>
    %cst_11 = arith.constant dense<0.000000e+00> : vector<8x8xf32>
    %12 = tpu.matmul %7, %9, %cst_11 {dimension_numbers = #tpu.dot_dimension_numbers<[1], [1], [0], [0], [0, 0, 1, 0], [], []>} : vector<8x8xbf16>, vector<8x8xbf16>, vector<8x8xf32> -> vector<8x8xf32>
    %cst_12 = arith.constant dense<0xFF800000> : vector<8xf32>
    %13 = vector.multi_reduction <maximumf>, %12, %cst_12 [1] : vector<8x8xf32> to vector<8xf32>
    %14 = vector.shape_cast %13 : vector<8xf32> to vector<8x1xf32>
    %15 = vector.broadcast %14 : vector<8x1xf32> to vector<8x8xf32>
    %16 = arith.subf %12, %15 : vector<8x8xf32>
    %17 = math.exp %16 : vector<8x8xf32>
    %cst_13 = arith.constant dense<0.000000e+00> : vector<8xf32>
    %18 = vector.multi_reduction <add>, %17, %cst_13 [1] : vector<8x8xf32> to vector<8xf32>
    %19 = vector.shape_cast %18 : vector<8xf32> to vector<8x1xf32>
    %20 = tpu.reciprocal %19 {approx = true} : vector<8x1xf32> -> vector<8x1xf32>
    %21 = vector.broadcast %20 : vector<8x1xf32> to vector<8x8xf32>
    %22 = arith.mulf %17, %21 : vector<8x8xf32>
    %c0_14 = arith.constant 0 : index
    %c0_15 = arith.constant 0 : index
    %c0_16 = arith.constant 0 : index
    %23 = vector.load %arg9[%c0_14, %c0_15, %c0_16] : memref<2x8x8xf32, #tpu.memory_space<vmem>>, vector<1x8x8xf32>
    %24 = vector.shape_cast %23 : vector<1x8x8xf32> to vector<8x8xf32>
    %25 = vector.shape_cast %22 : vector<8x8xf32> to vector<1x8x8xf32>
    tpu.vector_store %arg9[%c0_14, %c0_15, %c0_16], %25 {strides = array<i32>} : memref<2x8x8xf32, #tpu.memory_space<vmem>>, vector<1x8x8xf32>,
    %26 = arith.truncf %22 : vector<8x8xf32> to vector<8x8xbf16>
    %cst_17 = arith.constant dense<0.000000e+00> : vector<8x8xf32>
    %27 = tpu.matmul %26, %11, %cst_17 {dimension_numbers = #tpu.dot_dimension_numbers<[1], [0], [0], [1], [0, 0, 1, 1], [], []>} : vector<8x8xbf16>, vector<8x8xbf16>, vector<8x8xf32> -> vector<8x8xf32>
    %c0_18 = arith.constant 0 : index
    %c0_19 = arith.constant 0 : index
    %c0_20 = arith.constant 0 : index
    %28 = vector.load %arg8[%c0_18, %c0_19, %c0_20] : memref<2x8x8xf32, #tpu.memory_space<vmem>>, vector<1x8x8xf32>
    %29 = vector.shape_cast %28 : vector<1x8x8xf32> to vector<8x8xf32>
    %30 = vector.shape_cast %27 : vector<8x8xf32> to vector<1x8x8xf32>
    tpu.vector_store %arg8[%c0_18, %c0_19, %c0_20], %30 {strides = array<i32>} : memref<2x8x8xf32, #tpu.memory_space<vmem>>, vector<1x8x8xf32>,
    %c1 = arith.constant 1 : index
    %c0_21 = arith.constant 0 : index
    %c0_22 = arith.constant 0 : index
    %31 = vector.load %arg2[%c1, %c0_21, %c0_22] : memref<2x8x32xbf16, #tpu.memory_space<vmem>>, vector<1x8x32xbf16>
    %32 = vector.shape_cast %31 : vector<1x8x32xbf16> to vector<8x32xbf16>
    %cst_23 = arith.constant dense<0.000000e+00> : vector<8x8xf32>
    %33 = tpu.matmul %32, %3, %cst_23 {dimension_numbers = #tpu.dot_dimension_numbers<[1], [0], [0], [1], [0, 0, 1, 1], [], []>} : vector<8x32xbf16>, vector<32x8xbf16>, vector<8x8xf32> -> vector<8x8xf32>
    %34 = arith.truncf %33 : vector<8x8xf32> to vector<8x8xbf16>
    %c1_24 = arith.constant 1 : index
    %c0_25 = arith.constant 0 : index
    %c0_26 = arith.constant 0 : index
    %35 = vector.load %arg10[%c1_24, %c0_25, %c0_26] : memref<2x8x8xbf16, #tpu.memory_space<vmem>>, vector<1x8x8xbf16>
    %36 = vector.shape_cast %35 : vector<1x8x8xbf16> to vector<8x8xbf16>
    %c1_27 = arith.constant 1 : index
    %c0_28 = arith.constant 0 : index
    %c0_29 = arith.constant 0 : index
    %37 = vector.load %arg11[%c1_27, %c0_28, %c0_29] : memref<2x8x8xbf16, #tpu.memory_space<vmem>>, vector<1x8x8xbf16>
    %38 = vector.shape_cast %37 : vector<1x8x8xbf16> to vector<8x8xbf16>
    %cst_30 = arith.constant dense<0.000000e+00> : vector<8x8xf32>
    %39 = tpu.matmul %34, %36, %cst_30 {dimension_numbers = #tpu.dot_dimension_numbers<[1], [1], [0], [0], [0, 0, 1, 0], [], []>} : vector<8x8xbf16>, vector<8x8xbf16>, vector<8x8xf32> -> vector<8x8xf32>
    %cst_31 = arith.constant dense<0xFF800000> : vector<8xf32>
    %40 = vector.multi_reduction <maximumf>, %39, %cst_31 [1] : vector<8x8xf32> to vector<8xf32>
    %41 = vector.shape_cast %40 : vector<8xf32> to vector<8x1xf32>
    %42 = vector.broadcast %41 : vector<8x1xf32> to vector<8x8xf32>
    %43 = arith.subf %39, %42 : vector<8x8xf32>
    %44 = math.exp %43 : vector<8x8xf32>
    %cst_32 = arith.constant dense<0.000000e+00> : vector<8xf32>
    %45 = vector.multi_reduction <add>, %44, %cst_32 [1] : vector<8x8xf32> to vector<8xf32>
    %46 = vector.shape_cast %45 : vector<8xf32> to vector<8x1xf32>
    %47 = tpu.reciprocal %46 {approx = true} : vector<8x1xf32> -> vector<8x1xf32>
    %48 = vector.broadcast %47 : vector<8x1xf32> to vector<8x8xf32>
    %49 = arith.mulf %44, %48 : vector<8x8xf32>
    %c1_33 = arith.constant 1 : index
    %c0_34 = arith.constant 0 : index
    %c0_35 = arith.constant 0 : index
    %50 = vector.load %arg9[%c1_33, %c0_34, %c0_35] : memref<2x8x8xf32, #tpu.memory_space<vmem>>, vector<1x8x8xf32>
    %51 = vector.shape_cast %50 : vector<1x8x8xf32> to vector<8x8xf32>
    %52 = vector.shape_cast %49 : vector<8x8xf32> to vector<1x8x8xf32>
    tpu.vector_store %arg9[%c1_33, %c0_34, %c0_35], %52 {strides = array<i32>} : memref<2x8x8xf32, #tpu.memory_space<vmem>>, vector<1x8x8xf32>,
    %53 = arith.truncf %49 : vector<8x8xf32> to vector<8x8xbf16>
    %cst_36 = arith.constant dense<0.000000e+00> : vector<8x8xf32>
    %54 = tpu.matmul %53, %38, %cst_36 {dimension_numbers = #tpu.dot_dimension_numbers<[1], [0], [0], [1], [0, 0, 1, 1], [], []>} : vector<8x8xbf16>, vector<8x8xbf16>, vector<8x8xf32> -> vector<8x8xf32>
    %c1_37 = arith.constant 1 : index
    %c0_38 = arith.constant 0 : index
    %c0_39 = arith.constant 0 : index
    %55 = vector.load %arg8[%c1_37, %c0_38, %c0_39] : memref<2x8x8xf32, #tpu.memory_space<vmem>>, vector<1x8x8xf32>
    %56 = vector.shape_cast %55 : vector<1x8x8xf32> to vector<8x8xf32>
    %57 = vector.shape_cast %54 : vector<8x8xf32> to vector<1x8x8xf32>
    tpu.vector_store %arg8[%c1_37, %c0_38, %c0_39], %57 {strides = array<i32>} : memref<2x8x8xf32, #tpu.memory_space<vmem>>, vector<1x8x8xf32>,
    return
  }
  func.func @transform_0(%arg0: i32, %arg1: i32) -> (i32, i32, i32) {
    %c0_i32 = arith.constant 0 : i32
    %c0_i32_0 = arith.constant 0 : i32
    return %arg0, %arg1, %c0_i32 : i32, i32, i32
  }
  func.func @transform_1(%arg0: i32, %arg1: i32) -> (i32, i32, i32) {
    %c0_i32 = arith.constant 0 : i32
    %c0_i32_0 = arith.constant 0 : i32
    %c0_i32_1 = arith.constant 0 : i32
    return %arg0, %c0_i32, %c0_i32_0 : i32, i32, i32
  }
  func.func @transform_2(%arg0: i32, %arg1: i32) -> (i32, i32, i32) {
    %c0_i32 = arith.constant 0 : i32
    %c0_i32_0 = arith.constant 0 : i32
    %c0_i32_1 = arith.constant 0 : i32
    return %arg0, %c0_i32, %c0_i32_0 : i32, i32, i32
  }
  func.func @transform_3(%arg0: i32, %arg1: i32) -> (i32, i32) {
    %c0_i32 = arith.constant 0 : i32
    %c0_i32_0 = arith.constant 0 : i32
    %c0_i32_1 = arith.constant 0 : i32
    return %c0_i32, %c0_i32_0 : i32, i32
  }
  func.func @transform_4(%arg0: i32, %arg1: i32) -> (i32, i32) {
    %c0_i32 = arith.constant 0 : i32
    %c0_i32_0 = arith.constant 0 : i32
    %c0_i32_1 = arith.constant 0 : i32
    return %c0_i32, %c0_i32_0 : i32, i32
  }
  func.func @transform_5(%arg0: i32, %arg1: i32) -> (i32, i32) {
    %c0_i32 = arith.constant 0 : i32
    %c0_i32_0 = arith.constant 0 : i32
    %c0_i32_1 = arith.constant 0 : i32
    return %c0_i32, %c0_i32_0 : i32, i32
  }
  func.func @transform_6(%arg0: i32, %arg1: i32) -> (i32, i32, i32) {
    %c0_i32 = arith.constant 0 : i32
    %c0_i32_0 = arith.constant 0 : i32
    return %arg0, %arg1, %c0_i32 : i32, i32, i32
  }
  func.func @transform_7(%arg0: i32, %arg1: i32) -> (i32, i32, i32) {
    %c0_i32 = arith.constant 0 : i32
    %c0_i32_0 = arith.constant 0 : i32
    return %arg0, %arg1, %c0_i32 : i32, i32, i32
  }
}

</mosaic_0001>

<bundles_post_ra>
// kernel: tpu_custom_call.1
= control target key start
LH: loop header
LB: loop body
LE: loop exit
PB: predicated region body
PF: predicated region fallthrough
CT: control target
= control target key end

     0   :  { %13 = vsyncpa [#allocation5], 0  ;;  %v797_v1 = vmov 0.0   ;;  %vm798_vm0 = vmmov 0   ;;  %vm53_vm1 = vcmask 261120   ;;  %s947_s0 = inlined_call_operand.vmem [shape: bf16[2,8,32], index: 0, kind: input, shape index: {}]   ;;  %s948_s1 = inlined_call_operand.vmem [shape: bf16[2,8,32], index: 1, kind: input, shape index: {}]   ;;  %s949_s2 = inlined_call_operand.vmem [shape: bf16[2,8,32], index: 2, kind: input, shape index: {}]   ;;  %s950_s3 = inlined_call_operand.vmem [shape: bf16[32,8], index: 3, kind: input, shape index: {}]   ;;  %s951_s4 = inlined_call_operand.vmem [shape: bf16[32,8], index: 4, kind: input, shape index: {}]   ;;  %s952_s5 = inlined_call_operand.vmem [shape: bf16[32,8], index: 5, kind: input, shape index: {}]   ;;  %s953_s6 = inlined_call_operand.hbm [shape: f32[2,8,8], index: 6, kind: output, shape index: {0}]   ;;  %s954_s7 = inlined_call_operand.hbm [shape: f32[2,8,8], index: 7, kind: output, shape index: {1}]  }
   0x1   :  { %v739_v0 = vld [vmem:[%s951_s4 + $0x8] sm:$0xff]   ;;  %661 = vmatprep.subr.bf16.mxu0 %v797_v1  ;;  %669 = vmatprep.subr.bf16.mxu1 %v797_v1  ;;  %v740_v2 = vld [vmem:[%s951_s4] sm:$0xff]  }
   0x2   :  { %662 = vmatpush3.bf16.msra.mxu0 %v739_v0  ;;  %665 = vmatprep.mubr.msk.bf16.mxu0 %vm798_vm0, %v797_v1  ;;  %v40_v3 = vld [vmem:[%s948_s1] sm:$0xf]  ;;  %v743_v4 = vld [vmem:[%s952_s5 + $0x8] sm:$0xff]  }
   0x3   :  { %663 = vmatprep.subr.bf16.mxu0 %v797_v1  ;;  %673 = vmatprep.mubr.msk.bf16.mxu1 %vm798_vm0, %v797_v1  ;;  %v744_v5 = vld [vmem:[%s952_s5] sm:$0xff]  }
   0x4   :  { %670 = vmatpush3.bf16.msra.mxu1 %v743_v4 }
   0x6   :  { %664 = vmatpush3.bf16.msra.mxu0 %v740_v2 }
   0x7   :  { %677 = vmatprep.subr.bf16.mxu0 %v797_v1 }
   0x8   :  { %14 = vsyncpa [#allocation7], 0  ;;  %671 = vmatprep.subr.bf16.mxu1 %v797_v1  ;;  %v100_v6 = vld [vmem:[%s949_s2] sm:$0xf]  ;;  %v622_v7 = vld [vmem:[%s948_s1 + $0x4] sm:$0xf] }
   0x9   :  { %666 = vmatmul.mubr.msk.bf16.vlgmr.msra.gmra.mxu0 %vm53_vm1, %v40_v3  ;;  %672 = vmatpush3.bf16.msra.mxu1 %v744_v5  ;;  %v741_v8 = vld [vmem:[%s950_s3 + $0x8] sm:$0xff]   ;;  %v742_v9 = vld [vmem:[%s950_s3] sm:$0xff]   ;;  %vm98_vm2 = vcmask 60416   ;;  %vm318_vm3 = vcmask 64512   ;;  %vm381_vm4 = vcmask 1043456  }
   0xa   :  { %678 = vmatpush3.bf16.msra.mxu0 %v739_v0  ;;  %681 = vmatprep.mubr.msk.bf16.mxu0 %vm798_vm0, %v797_v1  ;;  %v258_v10 = vld [vmem:[%s947_s0] sm:$0xf]  ;;  %v624_v11 = vld [vmem:[%s949_s2 + $0x4] sm:$0xf] }
   0xb   :  { %679 = vmatprep.subr.bf16.mxu0 %v797_v1  ;;  %685 = vmatprep.subr.bf16.mxu1 %v797_v1  ;;  %v631_v42 = vld [vmem:[%s947_s0 + $0x4] sm:$0xf]  ;;  %s799_s0 = smov [#allocation6]  }
   0xc   :  { %674 = vmatmul.mubr.msk.bf16.vlgmr.msra.gmra.mxu1 %vm53_vm1, %v100_v6  ;;  %s601_s20 = sshll.u32 %s799_s0, 4  ;;  %s602_s20 = int_to_ptr.vmem [resolvable:$true] %s601_s20 }
   0xd   :  { %686 = vmatpush3.bf16.msra.mxu1 %v743_v4  ;;  %689 = vmatprep.mubr.msk.bf16.mxu1 %vm798_vm0, %v797_v1  ;;  %s753_s21 = scalar_lea.vmem %s602_s20, 256  ;;  %p758_p1 = scmp.lt.s32.totalorder %s602_s20, %s602_s20 }
   0xe   :  { %680 = vmatpush3.bf16.msra.mxu0 %v740_v2  ;;  %687 = vmatprep.subr.bf16.mxu1 %v797_v1  ;;  %p754_p0 = scmp.ne.s32.totalorder %s602_s20, %s753_s21  ;;  %p759_p2 = scmp.lt.s32.totalorder %s753_s21, %s753_s21 }
   0xf   :  { %693 = vmatprep.subr.bf16.mxu0 %v797_v1 }
  0x10   :  { %p760_p3 = por %p759_p2, %p758_p1 }
  0x11   :  { %682 = vmatmul.mubr.msk.bf16.vlgmr.msra.gmra.mxu0 %vm53_vm1, %v622_v7  ;;  %688 = vmatpush3.bf16.msra.mxu1 %v744_v5 }
  0x12   :  { %694 = vmatpush3.bf16.msra.mxu0 %v741_v8  ;;  %697 = vmatprep.mubr.msk.bf16.mxu0 %vm798_vm0, %v797_v1  ;;  %p761_p4 = pnand %p760_p3, %p754_p0 }
  0x13   :  { %695 = vmatprep.subr.bf16.mxu0 %v797_v1  ;;  %701 = vmatprep.subr.bf16.mxu1 %v797_v1 }
  0x14   :  { %690 = vmatmul.mubr.msk.bf16.vlgmr.msra.gmra.mxu1 %vm53_vm1, %v624_v11 }
  0x15   :  { %703 = vmatprep.mubr.msk.bf16.mxu1 %vm798_vm0, %v797_v1 }
  0x16   :  { %696 = vmatpush3.bf16.msra.mxu0 %v742_v9 }
  0x17   :  { %707 = vmatprep.subr.bf16.mxu0 %v797_v1 }
  0x19   :  { %698 = vmatmul.mubr.msk.bf16.vlgmr.msra.gmra.mxu0 %vm53_vm1, %v258_v10 }
  0x1a   :  { %709 = vmatprep.mubr.msk.bf16.mxu0 %vm798_vm0, %v797_v1 }
  0xc9   :  { %v91_v12 = vpop.f32.mrf.mxu0 }
  0xca   :  { %v97_v13 = vpack.c.bf16 %v91_v12, %v91_v12 }
  0xcb   :  { %v667_v14 = vpop.f32.mrf.mxu0 }
  0xcc   :  { %99 = vst.msk [vmem:[#allocation2] sm:$0xf] %vm98_vm2, %v97_v13  ;;  %v150_v16 = vpop.f32.mrf.mxu1 }
  0xcd   :  { %v94_v15 = vpop.f32.mrf.mxu0  ;;  %v156_v18 = vpack.c.bf16 %v150_v16, %v150_v16 }
  0xce   :  { %v675_v19 = vpop.f32.mrf.mxu1 }
  0xcf   :  { %v668_v17 = vpop.f32.mrf.mxu0  ;;  %157 = vst.msk [vmem:[#allocation3] sm:$0xf] %vm98_vm2, %v156_v18 }
  0xd0   :  { %v153_v22 = vpop.f32.mrf.mxu1 }
  0xd1   :  { %v197_v20 = vpop.f32.mrf.mxu0 }
  0xd2   :  { %v203_v21 = vpack.c.bf16 %v197_v20, %v197_v20  ;;  %v676_v26 = vpop.f32.mrf.mxu1 }
  0xd3   :  { %v683_v23 = vpop.f32.mrf.mxu0  ;;  %v316_v24 = vld [vmem:[#allocation2] sm:$0xf] }
  0xd4   :  { %205 = vst.msk [vmem:[#allocation2 + $0x4] sm:$0xf] %vm98_vm2, %v203_v21  ;;  %v323_v25 = vsel %vm318_vm3, %v316_v24, 0  ;;  %v245_v36 = vpop.f32.mrf.mxu1 }
  0xd5   :  { %v200_v27 = vpop.f32.mrf.mxu0  ;;  %702 = vmatpush3.bf16.xpose.msra.mxu1 %v323_v25  ;;  %v251_v37 = vpack.c.bf16 %v245_v36, %v245_v36 }
  0xd6   :  { %713 = vmatprep.subr.bf16.mxu1 %v797_v1  ;;  %v317_v29 = vld [vmem:[#allocation3] sm:$0xf]  ;;  %v691_v38 = vpop.f32.mrf.mxu1 }
  0xd7   :  { %v684_v28 = vpop.f32.mrf.mxu0  ;;  %v383_v31 = vsel %vm381_vm4, %v317_v29, 0  ;;  %253 = vst.msk [vmem:[#allocation3 + $0x4] sm:$0xf] %vm98_vm2, %v251_v37 }
  0xd8   :  { %708 = vmatpush3.bf16.msra.mxu0 %v383_v31  ;;  %v248_v39 = vpop.f32.mrf.mxu1 }
  0xd9   :  { %v309_v30 = vpop.f32.mrf.mxu0  ;;  %721 = vmatprep.subr.bf16.mxu0 %v797_v1 }
  0xda   :  { %v315_v32 = vpack.c.bf16 %v309_v30, %v309_v30  ;;  %v692_v40 = vpop.f32.mrf.mxu1 }
  0xdb   :  { %v699_v33 = vpop.f32.mrf.mxu0  ;;  %v473_v61 = vld [vmem:[#allocation2 + $0x4] sm:$0xf] }
  0xdc   :  { %704 = vmatmul.mubr.msk.bf16.vlgmr.msra.gmra.mxu1 %vm318_vm3, %v315_v32  ;;  %v480_v63 = vsel %vm318_vm3, %v473_v61, 0 }
  0xdd   :  { %v312_v34 = vpop.f32.mrf.mxu0  ;;  %714 = vmatpush3.bf16.msra.mxu1 %v741_v8  ;;  %717 = vmatprep.mubr.msk.bf16.mxu1 %vm798_vm0, %v797_v1 }
  0xde   :  { %715 = vmatprep.subr.bf16.mxu1 %v797_v1  ;;  %v475_v41 = vld [vmem:[#allocation3 + $0x4] sm:$0xf] }
  0xdf   :  { %v700_v35 = vpop.f32.mrf.mxu0  ;;  %v540_v43 = vsel %vm381_vm4, %v475_v41, 0 }
  0xe1   :  { %716 = vmatpush3.bf16.msra.mxu1 %v742_v9 }
  0xe2   :  { %727 = vmatprep.subr.bf16.mxu1 %v797_v1 }
  0xe4   :  { %718 = vmatmul.mubr.msk.bf16.vlgmr.msra.gmra.mxu1 %vm53_vm1, %v631_v42 }
  0xe5   :  { %728 = vmatpush3.bf16.msra.mxu1 %v540_v43  ;;  %729 = vmatprep.mubr.msk.bf16.mxu1 %vm798_vm0, %v797_v1 }
 0x19c   :  { %v359_v44 = vpop.f32.mrf.mxu1 }
 0x19d   :  { %v365_v45 = vsel %vm318_vm3, %v359_v44, -inf }
 0x19e   :  { %366 = vmax.xlane.f32.xlu0 %v365_v45  ;;  %v705_v46 = vpop.f32.mrf.mxu1 }
 0x1a0   :  { %v362_v47 = vpop.f32.mrf.mxu1 }
 0x1a2   :  { %v706_v48 = vpop.f32.mrf.mxu1 }
 0x1a4   :  { %v465_v54 = vpop.f32.mrf.mxu1 }
 0x1a5   :  { %v471_v0 = vpack.c.bf16 %v465_v54, %v465_v54 }
 0x1a6   :  { %v719_v55 = vpop.f32.mrf.mxu1 }
 0x1a8   :  { %v468_v56 = vpop.f32.mrf.mxu1 }
 0x1aa   :  { %v720_v57 = vpop.f32.mrf.mxu1 }
 0x227   :  { %v367_v49 = vpop.xlane.xlu0 %366 }
 0x228   :  { %v368_v50 = vsub.f32 %v359_v44, %v367_v49 }
 0x22a   :  { %v369_v51 = vmul.f32 1.442695, %v368_v50 }
 0x22c   :  { %745 = vpow2.f32 %v369_v51 }
 0x239   :  { %v746_v52 = vpop.eup %745 }
 0x23a   :  { %v371_v53 = vsel %vm318_vm3, %v746_v52, 0.0 }
 0x23b   :  { %372 = vadd.xlane.f32.xlu0 %v371_v53 }
 0x2c4   :  { %v373_v58 = vpop.xlane.xlu0 %372 }
 0x2c5   :  { %747 = vrcp.f32 %v373_v58 }
 0x2d2   :  { %v748_v59 = vpop.eup %747 }
 0x2d3   :  { %v375_v60 = vmul.f32 %v748_v59, %v746_v52 }
 0x2d5   :  { %376 = vst.msk [vmem:[#allocation6] sm:$0xff] %vm318_vm3, %v375_v60  ;;  %v377_v62 = vpack.c.bf16 %v375_v60, %v375_v60 }
 0x2d7   :  { %710 = vmatmul.mubr.msk.bf16.vlgmr.msra.gmra.mxu0 %vm318_vm3, %v377_v62 }
 0x2d8   :  { %722 = vmatpush3.bf16.xpose.msra.mxu0 %v480_v63  ;;  %723 = vmatprep.mubr.msk.bf16.mxu0 %vm798_vm0, %v797_v1 }
 0x2df   :  { %724 = vmatmul.mubr.msk.bf16.vlgmr.msra.gmra.mxu0 %vm318_vm3, %v471_v0 }
 0x397   :  { %v419_v2 = vpop.f32.mrf.mxu0 }
 0x398   :  { %425 = vst.msk [vmem:[#allocation4] sm:$0xff] %vm318_vm3, %v419_v2 }
 0x399   :  { %v711_v3 = vpop.f32.mrf.mxu0 }
 0x39b   :  { %v422_v4 = vpop.f32.mrf.mxu0 }
 0x39d   :  { %v712_v5 = vpop.f32.mrf.mxu0 }
 0x39f   :  { %v516_v6 = vpop.f32.mrf.mxu0 }
 0x3a0   :  { %v522_v7 = vsel %vm318_vm3, %v516_v6, -inf }
 0x3a1   :  { %523 = vmax.xlane.f32.xlu1 %v522_v7  ;;  %v725_v8 = vpop.f32.mrf.mxu0 }
 0x3a3   :  { %v519_v9 = vpop.f32.mrf.mxu0 }
 0x3a5   :  { %v726_v10 = vpop.f32.mrf.mxu0 }
 0x42a   :  { %v524_v11 = vpop.xlane.xlu1 %523 }
 0x42b   :  { %v525_v12 = vsub.f32 %v516_v6, %v524_v11 }
 0x42d   :  { %v526_v13 = vmul.f32 1.442695, %v525_v12 }
 0x42f   :  { %749 = vpow2.f32 %v526_v13 }
 0x43c   :  { %v750_v1 = vpop.eup %749 }
 0x43d   :  { %v528_v14 = vsel %vm318_vm3, %v750_v1, 0.0 }
 0x43e   :  { %529 = vadd.xlane.f32.xlu1 %v528_v14 }
 0x4c7   :  { %v530_v15 = vpop.xlane.xlu1 %529 }
 0x4c8   :  { %751 = vrcp.f32 %v530_v15 }
 0x4d5   :  { %v752_v16 = vpop.eup %751 }
 0x4d6   :  { %v532_v17 = vmul.f32 %v752_v16, %v750_v1 }
 0x4d8   :  { %534 = vst.msk [vmem:[#allocation6 + $0x8] sm:$0xff] %vm318_vm3, %v532_v17  ;;  %v535_v18 = vpack.c.bf16 %v532_v17, %v532_v17 }
 0x4da   :  { %730 = vmatmul.mubr.msk.bf16.vlgmr.msra.gmra.mxu1 %vm318_vm3, %v535_v18 }
 0x4db   :  { %764 = shalt.err (!%p761_p4)
}
 0x4dc   :  { %s800_s22 = smov 128   ;;  %s801_s23 = smov 8  }
 0x4dd   :  { %607 = dma.vmem_to_hbm [thread:$0]  %s602_s20, 256, %s954_s7, [#allocation7], %s800_s22, %s800_s22, %s801_s23  }
 0x4de   :  { %s802_s26 = smov [#allocation4]  }
 0x4df   :  { %s589_s27 = sshll.u32 %s802_s26, 4  ;;  %s590_s27 = int_to_ptr.vmem [resolvable:$true] %s589_s27 }
 0x4e0   :  { %s773_s28 = scalar_lea.vmem %s590_s27, 256  ;;  %p778_p6 = scmp.lt.s32.totalorder %s590_s27, %s590_s27 }
 0x4e1   :  { %p774_p5 = scmp.ne.s32.totalorder %s590_s27, %s773_s28  ;;  %p779_p7 = scmp.lt.s32.totalorder %s773_s28, %s773_s28 }
 0x4e3   :  { %p780_p8 = por %p779_p7, %p778_p6 }
 0x4e5   :  { %p781_p9 = pnand %p780_p8, %p774_p5 }
 0x59a   :  { %v576_v19 = vpop.f32.mrf.mxu1 }
 0x59b   :  { %583 = vst.msk [vmem:[#allocation4 + $0x8] sm:$0xff] %vm318_vm3, %v576_v19 }
 0x59c   :  { %v731_v20 = vpop.f32.mrf.mxu1 }
 0x59d   :  { %784 = shalt.err (!%p781_p9)
}
 0x59e   :  { %595 = dma.vmem_to_hbm [thread:$0]  %s590_s27, 256, %s953_s6, [#allocation5], %s800_s22, %s800_s22, %s801_s23   ;;  %v579_v21 = vpop.f32.mrf.mxu1 }
 0x5a0   :  { %v732_v22 = vpop.f32.mrf.mxu1 }
 0x5a1   :  { %793 = dma.done.wait [#allocation5], 256  }
 0x5a2   :  { %794 = vsyncadd [#allocation5], 4294967040 }
 0x5a3   :  { %795 = dma.done.wait [#allocation7], 256  }
 0x5a4   :  { %796 = vsyncadd [#allocation7], 4294967040 }
 0x5a5   :  { %614 = vsyncpa [#allocation5], 1 }
 0x5a6   :  { %615 = vsyncpa [#allocation7], 1 }

</bundles_post_ra>
